<compile_context>
chip_gen: v6e
topology: v6e:2x2x1
jax: 0.10.0
libtpu: 0.0.40
codegen_flags: <defaults>
</compile_context>

<pallas_src>
import jax
import jax.numpy as jnp
from jax.experimental import pallas as pl
from jax.experimental.pallas import tpu as pltpu


def ffn_kernel(xT_ref, w1_ref, b1_ref, w2_ref, b2_ref, w3_ref, b3_ref,
               w4c_ref, b4_ref, o_ref):
    # Activations are [features, batch_tile]: batch on lanes, features on
    # sublanes -> VPU/EUP work and the output store are lane-dense.
    xT = xT_ref[...]                       # [dim_in, bm]
    w1 = w1_ref[...]                       # [dim_hidden, dim_in]
    dim_in = xT.shape[0]

    # --- Layer 1 (input): K = dim_in (=2) contraction. Broadcast FMAs on the
    # VPU instead of a degenerate (heavily padded) MXU matmul.
    acc = w1[:, 0:1] * xT[0:1, :] + b1_ref[...]         # [dim_hidden, bm]
    for k in range(1, dim_in):                          # static unroll
        acc = acc + w1[:, k:k + 1] * xT[k:k + 1, :]
    h1 = jnp.tanh(acc)

    # --- Layer 2 (hidden): the PyTorch loop feeds h1 every iteration, so one
    # application is exactly equivalent (numberHiddenLayers >= 2). MXU matmul.
    h2 = jnp.tanh(
        jnp.dot(w2_ref[...], h1, preferred_element_type=jnp.float32)
        + b2_ref[...])                                  # [dim_hidden, bm]

    # --- Layer 3 (hiddenToOutput): MXU matmul.
    h3 = jnp.tanh(
        jnp.dot(w3_ref[...], h2, preferred_element_type=jnp.float32)
        + b3_ref[...])                                  # [dim_out, bm]

    # --- Layer 4 (output, width 1): VPU multiply + sublane (XLU) reduction,
    # lane-dense [1, bm] store (never a masked (bm, 1) store).
    o_ref[...] = (jnp.sum(h3 * w4c_ref[...], axis=0, keepdims=True)
                  + b4_ref[...])                        # [1, bm]


def ffn_forward(x, params, *, block_m=None):
    """x: [n, dim_in] (PyTorch layout); params: ((W,b),...) W:[out,in], b:[out].

    block_m=None (default) -> single grid step covering the whole batch
    (recommended for v5e/v6e and for any n whose VMEM footprint fits — it
    does comfortably up to hundreds of thousands of points). For very large
    collocation batches pass block_m >= 2048 (multiple of 128).
    Call under jax.jit so the input transpose fuses into the pallas_call.
    """
    (w1, b1), (w2, b2), (w3, b3), (w4, b4) = params
    n, dim_in = x.shape
    dim_hidden = w1.shape[0]
    dim_out = w3.shape[0]

    if block_m is None:
        block_m = n                       # single grid step, works for any n
    else:
        assert n % block_m == 0, "batch must be divisible by block_m"
        assert block_m % 128 == 0, "keep the batch tile lane-dense"
    num_steps = n // block_m

    # Layout plumbing (fused into the pallas_call inputs via
    # allow_input_fusion when run under jit):
    xT = x.T                                            # [dim_in, n]
    b1c = b1.reshape(dim_hidden, 1)
    b2c = b2.reshape(dim_hidden, 1)
    b3c = b3.reshape(dim_out, 1)
    w4c = w4.reshape(dim_out, 1)                        # [1,dim_out] -> column
    b4c = b4.reshape(1, 1)

    def rep(a):  # full-array, grid-invariant block (stays resident in VMEM)
        return pl.BlockSpec(a.shape, lambda i: (0, 0))

    dim_sem = ("arbitrary",) if num_steps == 1 else ("parallel",)

    yT = pl.pallas_call(
        ffn_kernel,
        out_shape=jax.ShapeDtypeStruct((1, n), jnp.float32),
        grid_spec=pl.GridSpec(
            grid=(num_steps,),
            in_specs=[
                pl.BlockSpec((dim_in, block_m), lambda i: (0, i)),  # xT tile
                rep(w1), rep(b1c),
                rep(w2), rep(b2c),
                rep(w3), rep(b3c),
                rep(w4c), rep(b4c),
            ],
            out_specs=pl.BlockSpec((1, block_m), lambda i: (0, i)),
        ),
        compiler_params=pltpu.CompilerParams(
            dimension_semantics=dim_sem,
            allow_input_fusion=[True] * 9),
    )(xT, w1, b1c, w2, b2c, w3, b3c, w4c, b4c)

    # [1, n] row-major == [n, 1] row-major: pure reshape, no transpose.
    return yT.reshape(n, 1)


def init_linear(key, fan_in, fan_out):
    """torch.nn.Linear-style init: U(-1/sqrt(fan_in), 1/sqrt(fan_in)); W:[out,in]."""
    kw, kb = jax.random.split(key)
    bound = 1.0 / jnp.sqrt(jnp.float32(fan_in))
    w = jax.random.uniform(kw, (fan_out, fan_in), jnp.float32, -bound, bound)
    b = jax.random.uniform(kb, (fan_out,), jnp.float32, -bound, bound)
    return w, b


def ffn_reference(x, params):
    (w1, b1), (w2, b2), (w3, b3), (w4, b4) = params
    h1 = jnp.tanh(x @ w1.T + b1)
    # PyTorch loop feeds h1 every iteration -> collapses to one application.
    h2 = jnp.tanh(h1 @ w2.T + b2)
    h3 = jnp.tanh(h2 @ w3.T + b3)
    return h3 @ w4.T + b4


if __name__ == "__main__":
    # PINN on (t, x): dimIn = 2. Small deterministic example; the single-step
    # grid handles any batch size, and the whole problem is <1 MiB of VMEM.
    batch = 256
    dim_in, dim_hidden, dim_out = 2, 32, 16
    number_hidden_layers = 3  # >= 2; PyTorch loop collapses (see header note)

    key = jax.random.PRNGKey(0)
    k_x, k1, k2, k3, k4 = jax.random.split(key, 5)

    x = jax.random.normal(k_x, (batch, dim_in), jnp.float32)
    params = (
        init_linear(k1, dim_in, dim_hidden),      # self.input
        init_linear(k2, dim_hidden, dim_hidden),  # self.hidden
        init_linear(k3, dim_hidden, dim_out),     # self.hiddenToOutput
        init_linear(k4, dim_out, 1),              # self.output
    )

    # jit so the x.T / bias reshapes fuse into the pallas_call operands
    # (allow_input_fusion) and there is a single dispatch.
    fwd = jax.jit(lambda xx: ffn_forward(xx, params))

    y = jax.block_until_ready(fwd(x))

    y_ref = ffn_reference(x, params)
    assert y.shape == (batch, 1)
    assert jnp.allclose(y, y_ref, atol=1e-5, rtol=1e-5), "mismatch vs reference"

    print("KERNEL_OK")
</pallas_src>

<mosaic_0001>
module attributes {stable_mosaic.version = 11 : i64} {
  func.func @ffn_kernel(%arg0: i32, %arg1: memref<2x256xf32, #tpu.memory_space<vmem>>, %arg2: memref<32x2xf32, #tpu.memory_space<vmem>>, %arg3: memref<32x1xf32, #tpu.memory_space<vmem>>, %arg4: memref<32x32xf32, #tpu.memory_space<vmem>>, %arg5: memref<32x1xf32, #tpu.memory_space<vmem>>, %arg6: memref<16x32xf32, #tpu.memory_space<vmem>>, %arg7: memref<16x1xf32, #tpu.memory_space<vmem>>, %arg8: memref<16x1xf32, #tpu.memory_space<vmem>>, %arg9: memref<1x1xf32, #tpu.memory_space<vmem>>, %arg10: memref<1x256xf32, #tpu.memory_space<vmem>>) attributes {dimension_semantics = [#tpu.dimension_semantics<arbitrary>], iteration_bounds = array<i64: 1>, scalar_prefetch = 0 : i64, scratch_operands = 0 : i64, tpu.core_type = #tpu.core_type<tc>, window_params = [{transform_indices = @transform_0, window_bounds = array<i64: 2, 256>}, {pipeline_mode = #tpu.pipeline_mode<synchronous>, transform_indices = @transform_1, window_bounds = array<i64: 32, 2>}, {pipeline_mode = #tpu.pipeline_mode<synchronous>, transform_indices = @transform_2, window_bounds = array<i64: 32, 1>}, {pipeline_mode = #tpu.pipeline_mode<synchronous>, transform_indices = @transform_3, window_bounds = array<i64: 32, 32>}, {pipeline_mode = #tpu.pipeline_mode<synchronous>, transform_indices = @transform_4, window_bounds = array<i64: 32, 1>}, {pipeline_mode = #tpu.pipeline_mode<synchronous>, transform_indices = @transform_5, window_bounds = array<i64: 16, 32>}, {pipeline_mode = #tpu.pipeline_mode<synchronous>, transform_indices = @transform_6, window_bounds = array<i64: 16, 1>}, {pipeline_mode = #tpu.pipeline_mode<synchronous>, transform_indices = @transform_7, window_bounds = array<i64: 16, 1>}, {pipeline_mode = #tpu.pipeline_mode<synchronous>, transform_indices = @transform_8, window_bounds = array<i64: 1, 1>}, {transform_indices = @transform_9, window_bounds = array<i64: 1, 256>}]} {
    %c0 = arith.constant 0 : index
    %c0_0 = arith.constant 0 : index
    %0 = vector.load %arg1[%c0, %c0_0] : memref<2x256xf32, #tpu.memory_space<vmem>>, vector<2x256xf32>
    %c0_1 = arith.constant 0 : index
    %c0_2 = arith.constant 0 : index
    %1 = vector.load %arg2[%c0_1, %c0_2] : memref<32x2xf32, #tpu.memory_space<vmem>>, vector<32x2xf32>
    %2 = vector.extract_strided_slice %1 {offsets = [0, 0], sizes = [32, 1], strides = [1, 1]} : vector<32x2xf32> to vector<32x1xf32>
    %3 = vector.extract_strided_slice %0 {offsets = [0, 0], sizes = [1, 256], strides = [1, 1]} : vector<2x256xf32> to vector<1x256xf32>
    %4 = vector.broadcast %2 : vector<32x1xf32> to vector<32x256xf32>
    %5 = vector.broadcast %3 : vector<1x256xf32> to vector<32x256xf32>
    %6 = arith.mulf %4, %5 : vector<32x256xf32>
    %c0_3 = arith.constant 0 : index
    %c0_4 = arith.constant 0 : index
    %7 = vector.load %arg3[%c0_3, %c0_4] : memref<32x1xf32, #tpu.memory_space<vmem>>, vector<32x1xf32>
    %8 = vector.broadcast %7 : vector<32x1xf32> to vector<32x256xf32>
    %9 = arith.addf %6, %8 : vector<32x256xf32>
    %10 = vector.extract_strided_slice %1 {offsets = [0, 1], sizes = [32, 1], strides = [1, 1]} : vector<32x2xf32> to vector<32x1xf32>
    %11 = vector.extract_strided_slice %0 {offsets = [1, 0], sizes = [1, 256], strides = [1, 1]} : vector<2x256xf32> to vector<1x256xf32>
    %12 = vector.broadcast %10 : vector<32x1xf32> to vector<32x256xf32>
    %13 = vector.broadcast %11 : vector<1x256xf32> to vector<32x256xf32>
    %14 = arith.mulf %12, %13 : vector<32x256xf32>
    %15 = arith.addf %9, %14 : vector<32x256xf32>
    %16 = math.tanh %15 : vector<32x256xf32>
    %c0_5 = arith.constant 0 : index
    %c0_6 = arith.constant 0 : index
    %17 = vector.load %arg4[%c0_5, %c0_6] : memref<32x32xf32, #tpu.memory_space<vmem>>, vector<32x32xf32>
    %cst = arith.constant dense<0.000000e+00> : vector<32x256xf32>
    %18 = tpu.matmul %17, %16, %cst {dimension_numbers = #tpu.dot_dimension_numbers<[1], [0], [0], [1], [0, 0, 1, 1], [], []>} : vector<32x32xf32>, vector<32x256xf32>, vector<32x256xf32> -> vector<32x256xf32>
    %c0_7 = arith.constant 0 : index
    %c0_8 = arith.constant 0 : index
    %19 = vector.load %arg5[%c0_7, %c0_8] : memref<32x1xf32, #tpu.memory_space<vmem>>, vector<32x1xf32>
    %20 = vector.broadcast %19 : vector<32x1xf32> to vector<32x256xf32>
    %21 = arith.addf %18, %20 : vector<32x256xf32>
    %22 = math.tanh %21 : vector<32x256xf32>
    %c0_9 = arith.constant 0 : index
    %c0_10 = arith.constant 0 : index
    %23 = vector.load %arg6[%c0_9, %c0_10] : memref<16x32xf32, #tpu.memory_space<vmem>>, vector<16x32xf32>
    %cst_11 = arith.constant dense<0.000000e+00> : vector<16x256xf32>
    %24 = tpu.matmul %23, %22, %cst_11 {dimension_numbers = #tpu.dot_dimension_numbers<[1], [0], [0], [1], [0, 0, 1, 1], [], []>} : vector<16x32xf32>, vector<32x256xf32>, vector<16x256xf32> -> vector<16x256xf32>
    %c0_12 = arith.constant 0 : index
    %c0_13 = arith.constant 0 : index
    %25 = vector.load %arg7[%c0_12, %c0_13] : memref<16x1xf32, #tpu.memory_space<vmem>>, vector<16x1xf32>
    %26 = vector.broadcast %25 : vector<16x1xf32> to vector<16x256xf32>
    %27 = arith.addf %24, %26 : vector<16x256xf32>
    %28 = math.tanh %27 : vector<16x256xf32>
    %c0_14 = arith.constant 0 : index
    %c0_15 = arith.constant 0 : index
    %29 = vector.load %arg8[%c0_14, %c0_15] : memref<16x1xf32, #tpu.memory_space<vmem>>, vector<16x1xf32>
    %30 = vector.broadcast %29 : vector<16x1xf32> to vector<16x256xf32>
    %31 = arith.mulf %28, %30 : vector<16x256xf32>
    %cst_16 = arith.constant dense<0.000000e+00> : vector<256xf32>
    %32 = vector.multi_reduction <add>, %31, %cst_16 [0] : vector<16x256xf32> to vector<256xf32>
    %33 = vector.shape_cast %32 : vector<256xf32> to vector<1x256xf32>
    %c0_17 = arith.constant 0 : index
    %c0_18 = arith.constant 0 : index
    %34 = vector.load %arg9[%c0_17, %c0_18] : memref<1x1xf32, #tpu.memory_space<vmem>>, vector<1x1xf32>
    %35 = vector.broadcast %34 : vector<1x1xf32> to vector<1x256xf32>
    %36 = arith.addf %33, %35 : vector<1x256xf32>
    %c0_19 = arith.constant 0 : index
    %c0_20 = arith.constant 0 : index
    %37 = vector.load %arg10[%c0_19, %c0_20] : memref<1x256xf32, #tpu.memory_space<vmem>>, vector<1x256xf32>
    tpu.vector_store %arg10[%c0_19, %c0_20], %36 {strides = array<i32>} : memref<1x256xf32, #tpu.memory_space<vmem>>, vector<1x256xf32>,
    return
  }
  func.func @transform_0(%arg0: i32) -> (i32, i32) {
    %c0_i32 = arith.constant 0 : i32
    %c0_i32_0 = arith.constant 0 : i32
    return %c0_i32, %arg0 : i32, i32
  }
  func.func @transform_1(%arg0: i32) -> (i32, i32) {
    %c0_i32 = arith.constant 0 : i32
    %c0_i32_0 = arith.constant 0 : i32
    %c0_i32_1 = arith.constant 0 : i32
    return %c0_i32, %c0_i32_0 : i32, i32
  }
  func.func @transform_2(%arg0: i32) -> (i32, i32) {
    %c0_i32 = arith.constant 0 : i32
    %c0_i32_0 = arith.constant 0 : i32
    %c0_i32_1 = arith.constant 0 : i32
    return %c0_i32, %c0_i32_0 : i32, i32
  }
  func.func @transform_3(%arg0: i32) -> (i32, i32) {
    %c0_i32 = arith.constant 0 : i32
    %c0_i32_0 = arith.constant 0 : i32
    %c0_i32_1 = arith.constant 0 : i32
    return %c0_i32, %c0_i32_0 : i32, i32
  }
  func.func @transform_4(%arg0: i32) -> (i32, i32) {
    %c0_i32 = arith.constant 0 : i32
    %c0_i32_0 = arith.constant 0 : i32
    %c0_i32_1 = arith.constant 0 : i32
    return %c0_i32, %c0_i32_0 : i32, i32
  }
  func.func @transform_5(%arg0: i32) -> (i32, i32) {
    %c0_i32 = arith.constant 0 : i32
    %c0_i32_0 = arith.constant 0 : i32
    %c0_i32_1 = arith.constant 0 : i32
    return %c0_i32, %c0_i32_0 : i32, i32
  }
  func.func @transform_6(%arg0: i32) -> (i32, i32) {
    %c0_i32 = arith.constant 0 : i32
    %c0_i32_0 = arith.constant 0 : i32
    %c0_i32_1 = arith.constant 0 : i32
    return %c0_i32, %c0_i32_0 : i32, i32
  }
  func.func @transform_7(%arg0: i32) -> (i32, i32) {
    %c0_i32 = arith.constant 0 : i32
    %c0_i32_0 = arith.constant 0 : i32
    %c0_i32_1 = arith.constant 0 : i32
    return %c0_i32, %c0_i32_0 : i32, i32
  }
  func.func @transform_8(%arg0: i32) -> (i32, i32) {
    %c0_i32 = arith.constant 0 : i32
    %c0_i32_0 = arith.constant 0 : i32
    %c0_i32_1 = arith.constant 0 : i32
    return %c0_i32, %c0_i32_0 : i32, i32
  }
  func.func @transform_9(%arg0: i32) -> (i32, i32) {
    %c0_i32 = arith.constant 0 : i32
    %c0_i32_0 = arith.constant 0 : i32
    return %c0_i32, %arg0 : i32, i32
  }
}

</mosaic_0001>

<bundles_post_ra>
// kernel: _lambda_.2
= control target key start
LH: loop header
LB: loop body
LE: loop exit
PB: predicated region body
PF: predicated region fallthrough
CT: control target
= control target key end

     0   :  { %s983_s0 = inlined_call_operand.hbm [shape: f32[32,2], index: 0, kind: input, shape index: {}]   ;;  %s984_s1 = inlined_call_operand.hbm [shape: f32[32,1], index: 1, kind: input, shape index: {}]   ;;  %s985_s2 = inlined_call_operand.hbm [shape: f32[32,32], index: 2, kind: input, shape index: {}]   ;;  %s986_s3 = inlined_call_operand.hbm [shape: f32[32,1], index: 3, kind: input, shape index: {}]   ;;  %s987_s4 = inlined_call_operand.hbm [shape: f32[16,32], index: 4, kind: input, shape index: {}]   ;;  %s988_s5 = inlined_call_operand.hbm [shape: f32[16,1], index: 5, kind: input, shape index: {}]   ;;  %s989_s6 = inlined_call_operand.hbm [shape: f32[16,1], index: 6, kind: input, shape index: {}]   ;;  %s990_s7 = inlined_call_operand.<no memory space> [shape: f32[1,1], index: 7, kind: input, shape index: {}]   ;;  %s991_s8 = inlined_call_operand.vmem [shape: f32[256,2], index: 8, kind: input, shape index: {}]   ;;  %s992_s9 = inlined_call_operand.hbm [shape: f32[1,256], index: 9, kind: output, shape index: {}]  }
   0x1   :  { %v14_v0 = vstv %s990_s7 }
   0x2   :  { %15 = vst [vmem:[#allocation2] sm:$0x1] %v14_v0 }
   0x3   :  { %16 = vsyncpa [#allocation4], 0 }
   0x4   :  { %17 = vsyncpa [#allocation7], 0 }
   0x5   :  { %18 = vsyncpa [#allocation10], 0 }
   0x6   :  { %19 = vsyncpa [#allocation13], 0 }
   0x7   :  { %20 = vsyncpa [#allocation5], 0  ;;  %s841_s11 = smov [#allocation6]   ;;  %s842_s13 = smov [#allocation9]  }
   0x8   :  { %s40_s12 = sshll.u32 %s841_s11, 4  ;;  %s64_s14 = sshll.u32 %s842_s13, 4  ;;  %s41_s12 = int_to_ptr.vmem [resolvable:$true] %s40_s12  ;;  %s65_s14 = int_to_ptr.vmem [resolvable:$true] %s64_s14 }
   0x9   :  { %s679_s15 = scalar_lea.vmem %s41_s12, 512  ;;  %p684_p1 = scmp.lt.s32.totalorder %s41_s12, %s41_s12 }
   0xa   :  { %p680_p0 = scmp.ne.s32.totalorder %s41_s12, %s679_s15  ;;  %p685_p2 = scmp.lt.s32.totalorder %s679_s15, %s679_s15 }
   0xc   :  { %p686_p3 = por %p685_p2, %p684_p1 }
   0xe   :  { %p687_p4 = pnand %p686_p3, %p680_p0 }
  0x10   :  { %690 = shalt.err (!%p687_p4)
}
  0x11   :  { %s843_s7 = smov 128   ;;  %s844_s16 = smov 8  }
  0x12   :  { %46 = dma.hbm_to_vmem [thread:$0]  %s984_s1, 512, %s41_s12, [#allocation7], %s843_s7, %s843_s7, %s844_s16  }
  0x13   :  { %s699_s19 = scalar_lea.vmem %s65_s14, 512  ;;  %p704_p6 = scmp.lt.s32.totalorder %s65_s14, %s65_s14 }
  0x14   :  { %p700_p5 = scmp.ne.s32.totalorder %s65_s14, %s699_s19  ;;  %p705_p7 = scmp.lt.s32.totalorder %s699_s19, %s699_s19 }
  0x16   :  { %p706_p8 = por %p705_p7, %p704_p6 }
  0x18   :  { %p707_p9 = pnand %p706_p8, %p700_p5 }
  0x1a   :  { %710 = shalt.err (!%p707_p9)
}
  0x1b   :  { %70 = dma.hbm_to_vmem [thread:$0]  %s986_s3, 512, %s65_s14, [#allocation10], %s843_s7, %s843_s7, %s844_s16  }
  0x1c   :  { %s845_s22 = smov [#allocation12]   ;;  %s846_s24 = smov [#allocation3]  }
  0x1d   :  { %s88_s23 = sshll.u32 %s845_s22, 4  ;;  %s28_s25 = sshll.u32 %s846_s24, 4  ;;  %s89_s23 = int_to_ptr.vmem [resolvable:$true] %s88_s23  ;;  %s29_s25 = int_to_ptr.vmem [resolvable:$true] %s28_s25 }
  0x1e   :  { %s719_s1 = scalar_lea.vmem %s89_s23, 256  ;;  %p724_p11 = scmp.lt.s32.totalorder %s89_s23, %s89_s23 }
  0x1f   :  { %p720_p10 = scmp.ne.s32.totalorder %s89_s23, %s719_s1  ;;  %p725_p12 = scmp.lt.s32.totalorder %s719_s1, %s719_s1 }
  0x21   :  { %p726_p13 = por %p725_p12, %p724_p11 }
  0x23   :  { %p727_p0 = pnand %p726_p13, %p720_p10 }
  0x25   :  { %730 = shalt.err (!%p727_p0)
}
  0x26   :  { %94 = dma.hbm_to_vmem [thread:$0]  %s988_s5, 256, %s89_s23, [#allocation13], %s843_s7, %s843_s7, %s844_s16  }
  0x27   :  { %s739_s3 = scalar_lea.vmem %s29_s25, 512  ;;  %p744_p2 = scmp.lt.s32.totalorder %s29_s25, %s29_s25 }
  0x28   :  { %p740_p1 = scmp.ne.s32.totalorder %s29_s25, %s739_s3  ;;  %p745_p3 = scmp.lt.s32.totalorder %s739_s3, %s739_s3 }
  0x2a   :  { %p746_p4 = por %p745_p3, %p744_p2 }
  0x2c   :  { %p747_p5 = pnand %p746_p4, %p740_p1 }
  0x2e   :  { %750 = shalt.err (!%p747_p5)
}
  0x2f   :  { %34 = dma.hbm_to_vmem [thread:$0]  %s983_s0, 512, %s29_s25, [#allocation4], %s843_s7, %s843_s7, %s844_s16  }
  0x30   :  { %s847_s30 = smov [#allocation8]   ;;  %s848_s11 = smov [#allocation11]  }
  0x31   :  { %s52_s10 = sshll.u32 %s847_s30, 4  ;;  %s76_s12 = sshll.u32 %s848_s11, 4  ;;  %s53_s10 = int_to_ptr.vmem [resolvable:$true] %s52_s10  ;;  %s77_s12 = int_to_ptr.vmem [resolvable:$true] %s76_s12 }
  0x32   :  { %s759_s5 = scalar_lea.vmem %s53_s10, 512  ;;  %p764_p7 = scmp.lt.s32.totalorder %s53_s10, %s53_s10 }
  0x33   :  { %p760_p6 = scmp.ne.s32.totalorder %s53_s10, %s759_s5  ;;  %p765_p8 = scmp.lt.s32.totalorder %s759_s5, %s759_s5 }
  0x35   :  { %p766_p9 = por %p765_p8, %p764_p7 }
  0x37   :  { %p767_p10 = pnand %p766_p9, %p760_p6 }
  0x39   :  { %770 = shalt.err (!%p767_p10)
}
  0x3a   :  { %58 = dma.hbm_to_vmem [thread:$0]  %s985_s2, 512, %s53_s10, [#allocation7], %s843_s7, %s843_s7, %s844_s16  }
  0x3b   :  { %s779_s0 = scalar_lea.vmem %s77_s12, 256  ;;  %p784_p12 = scmp.lt.s32.totalorder %s77_s12, %s77_s12 }
  0x3c   :  { %p780_p11 = scmp.ne.s32.totalorder %s77_s12, %s779_s0  ;;  %p785_p13 = scmp.lt.s32.totalorder %s779_s0, %s779_s0 }
  0x3e   :  { %p786_p0 = por %p785_p13, %p784_p12 }
  0x40   :  { %p787_p1 = pnand %p786_p0, %p780_p11 }
  0x42   :  { %790 = shalt.err (!%p787_p1)
}
  0x43   :  { %82 = dma.hbm_to_vmem [thread:$0]  %s987_s4, 256, %s77_s12, [#allocation10], %s843_s7, %s843_s7, %s844_s16  }
  0x44   :  { %s849_s18 = smov [#allocation14]  }
  0x45   :  { %s100_s19 = sshll.u32 %s849_s18, 4  ;;  %s101_s19 = int_to_ptr.vmem [resolvable:$true] %s100_s19 }
  0x46   :  { %s799_s20 = scalar_lea.vmem %s101_s19, 256  ;;  %p804_p3 = scmp.lt.s32.totalorder %s101_s19, %s101_s19 }
  0x47   :  { %p800_p2 = scmp.ne.s32.totalorder %s101_s19, %s799_s20  ;;  %p805_p4 = scmp.lt.s32.totalorder %s799_s20, %s799_s20 }
  0x49   :  { %p806_p5 = por %p805_p4, %p804_p3 }
  0x4b   :  { %p807_p6 = pnand %p806_p5, %p800_p2 }
  0x4d   :  { %810 = shalt.err (!%p807_p6)
}
  0x4e   :  { %106 = dma.hbm_to_vmem [thread:$0]  %s989_s6, 256, %s101_s19, [#allocation13], %s843_s7, %s843_s7, %s844_s16  }
  0x4f   :  { %831 = dma.done.wait [#allocation4], 512  }
  0x50   :  { %832 = vsyncadd [#allocation4], 4294966784 }
  0x51   :  { %833 = dma.done.wait [#allocation7], 1024  }
  0x52   :  { %834 = vsyncadd [#allocation7], 4294966272 }
  0x53   :  { %835 = dma.done.wait [#allocation10], 768  }
  0x54   :  { %836 = vsyncadd [#allocation10], 4294966528 }
  0x55   :  { %837 = dma.done.wait [#allocation13], 512  }
  0x56   :  { %838 = vsyncadd [#allocation13], 4294966784  ;;  %v850_v1 = vmov 0   ;;  %v195_v2 = vld [vmem:[#allocation6 + $0x18] sm:$0xff]  ;;  %v143_v4 = vld [vmem:[#allocation3 + $0x10] sm:$0xff]  ;;  %v851_v6 = vmov 1   ;;  %v166_v22 = vlaneseq }
  0x57   :  { %626 = vset.pattern.permute.xlu1 %v850_v1  ;;  %625 = vset.pattern.permute.xlu0 %v850_v1  ;;  %v144_v3 = vld [vmem:[#allocation3 + $0x18] sm:$0xff]  ;;  %v142_v7 = vld [vmem:[#allocation3 + $0x8] sm:$0xff]  ;;  %v194_v8 = vld [vmem:[#allocation6 + $0x10] sm:$0xff]  ;;  %v852_v16 = vmov 0.0   ;;  %vm310_vm0 = vcmask 261120   ;;  %s854_s6 = smov [#allocation15]  }
  0x58   :  { %213 = vperm.xlu1 %626, %v195_v2   ;;  %162 = vperm.xlu0 %625, %v144_v3   ;;  %v130_v5 = vld [vmem:[%s991_s8] sm:$0xf]   ;;  %v193_v10 = vld [vmem:[#allocation6 + $0x8] sm:$0xff]  ;;  %v288_v18 = vld [vmem:[#allocation9 + $0x10] sm:$0xff]  ;;  %v956_v23 = vshrl.u32 %v166_v22, 7  ;;  %s592_s8 = sshll.u32 %s854_s6, 4  ;;  %s593_s8 = int_to_ptr.vmem [resolvable:$true] %s592_s8 }
  0x59   :  { %133 = vst [vmem:[#allocation16] sm:$0xf] %v130_v5   ;;  %v141_v9 = vld [vmem:[#allocation3] sm:$0xff]  ;;  %v289_v12 = vld [vmem:[#allocation9 + $0x18] sm:$0xff]  ;;  %v287_v13 = vld [vmem:[#allocation9 + $0x8] sm:$0xff]  ;;  %387 = vmatprep.mubr.f32.mxu0 %v852_v16  ;;  %504 = vmatprep.mubr.f32.mxu1 %v852_v16  ;;  %vm583_vm1 = vcmp.lt.s32.totalorder %v166_v22, 256  ;;  %p816_p8 = scmp.lt.s32.totalorder %s593_s8, %s593_s8 }
  0x5a   :  { %v192_v11 = vld [vmem:[#allocation6] sm:$0xff]  ;;  %v423_v15 = vld [vmem:[#allocation12 + $0x8] sm:$0xff]  ;;  %v522_v17 = vld [vmem:[#allocation14 + $0x8] sm:$0xff]  ;;  %v959_v24 = vsub.s32 0, %v956_v23  ;;  %v172_v25 = vsub.s32 2, %v956_v23  ;;  %v242_v29 = vsub.s32 1, %v956_v23 }
  0x5b   :  { %v286_v14 = vld [vmem:[#allocation9] sm:$0xff]  ;;  %v422_v19 = vld [vmem:[#allocation12] sm:$0xff]  ;;  %v551_v21 = vld [vmem:[#allocation2] sm:$0x1]  ;;  %v246_v30 = vsub.s32 3, %v956_v23  ;;  %s811_s7 = scalar_lea.vmem %s593_s8, 32 }
  0x5c   :  { %627 = vset.pattern.permute.xlu1 %v851_v6  ;;  %157 = vperm.xlu0 %625, %v143_v4   ;;  %v521_v20 = vld [vmem:[#allocation14] sm:$0xff]  ;;  %p812_p7 = scmp.ne.s32.totalorder %s593_s8, %s811_s7  ;;  %p817_p9 = scmp.lt.s32.totalorder %s811_s7, %s811_s7 }
  0x5d   :  { %237 = vperm.xlu1 %627, %v144_v3  }
  0x5e   :  { %p818_p10 = por %p817_p9, %p816_p8 }
  0x60   :  { %152 = vperm.xlu0 %625, %v142_v7   ;;  %v140_v26 = vld [vmem:[#allocation16] sm:$0xf]  ;;  %p819_p11 = pnand %p818_p10, %p812_p7 }
  0x61   :  { %628 = vset.pattern.permute.xlu1 %v850_v1  ;;  %v169_v27 = vrot.slane %v140_v26, %v959_v24  ;;  %v173_v28 = vrot.slane %v140_v26, %v172_v25  ;;  %v243_v33 = vrot.slane %v140_v26, %v242_v29  ;;  %v247_v34 = vrot.slane %v140_v26, %v246_v30  ;;  %v283_v30 = vld [vmem:[#allocation8 + $0x8] sm:$0xff] }
  0x62   :  { %208 = vperm.xlu1 %628, %v194_v8  }
  0x63   :  { %v179_v31 = vrot.slane %v169_v27, %v959_v24  ;;  %v183_v32 = vrot.slane %v173_v28, %v959_v24  ;;  %v253_v39 = vrot.slane %v243_v33, %v242_v29  ;;  %v257_v40 = vrot.slane %v247_v34, %v242_v29  ;;  %v282_v29 = vld [vmem:[#allocation8] sm:$0xff] }
  0x64   :  { %629 = vset.pattern.permute.xlu0 %v851_v6 }
  0x65   :  { %233 = vperm.xlu0 %629, %v143_v4  }
  0x66   :  { %147 = vperm.xlu1 %628, %v141_v9  }
  0x69   :  { %229 = vperm.xlu0 %629, %v142_v7  }
  0x6a   :  { %203 = vperm.xlu1 %628, %v193_v10  }
  0x6d   :  { %225 = vperm.xlu0 %629, %v141_v9  }
  0x6e   :  { %198 = vperm.xlu1 %628, %v192_v11  }
  0x71   :  { %630 = vset.pattern.permute.xlu0 %v850_v1 }
  0x72   :  { %307 = vperm.xlu1 %628, %v289_v12   ;;  %302 = vperm.xlu0 %630, %v288_v18  }
  0x76   :  { %297 = vperm.xlu1 %628, %v287_v13   ;;  %426 = vperm.xlu0 %630, %v422_v19  }
  0x7a   :  { %292 = vperm.xlu1 %628, %v286_v14   ;;  %525 = vperm.xlu0 %630, %v521_v20  }
  0x7e   :  { %431 = vperm.xlu1 %628, %v423_v15   ;;  %554 = vperm.xlu0 %630, %v551_v21  }
  0x82   :  { %530 = vperm.xlu1 %628, %v522_v17  }
  0xd3   :  { %v214_v35 = vpop.permute.xlu1 %213  ;;  %v163_v36 = vpop.permute.xlu0 %162 }
  0xd4   :  { %v190_v37 = vmul.f32 %v179_v31, %v163_v36  ;;  %v191_v38 = vmul.f32 %v183_v32, %v163_v36 }
  0xd6   :  { %v222_v43 = vadd.f32 %v214_v35, %v190_v37  ;;  %v223_v44 = vadd.f32 %v214_v35, %v191_v38 }
  0xd7   :  { %v158_v41 = vpop.permute.xlu0 %157 }
  0xd8   :  { %v238_v42 = vpop.permute.xlu1 %237  ;;  %v188_v51 = vmul.f32 %v179_v31, %v158_v41  ;;  %v189_v52 = vmul.f32 %v183_v32, %v158_v41 }
  0xd9   :  { %v264_v45 = vmul.f32 %v253_v39, %v238_v42  ;;  %v265_v46 = vmul.f32 %v257_v40, %v238_v42 }
  0xdb   :  { %v272_v47 = vadd.f32 %v264_v45, %v222_v43  ;;  %v153_v48 = vpop.permute.xlu0 %152  ;;  %v273_v49 = vadd.f32 %v265_v46, %v223_v44 }
  0xdc   :  { %v186_v61 = vmul.f32 %v179_v31, %v153_v48  ;;  %v187_v62 = vmul.f32 %v183_v32, %v153_v48 }
  0xdd   :  { %631 = vtanh.f32 %v272_v47  ;;  %v209_v50 = vpop.permute.xlu1 %208 }
  0xde   :  { %633 = vtanh.f32 %v273_v49  ;;  %v220_v54 = vadd.f32 %v209_v50, %v188_v51  ;;  %v221_v55 = vadd.f32 %v209_v50, %v189_v52 }
  0xe0   :  { %v234_v53 = vpop.permute.xlu0 %233 }
  0xe1   :  { %v262_v56 = vmul.f32 %v253_v39, %v234_v53  ;;  %v263_v57 = vmul.f32 %v257_v40, %v234_v53  ;;  %v148_v58 = vpop.permute.xlu1 %147 }
  0xe2   :  { %v184_v5 = vmul.f32 %v179_v31, %v148_v58  ;;  %v185_v6 = vmul.f32 %v183_v32, %v148_v58  ;;  %v284_v31 = vld [vmem:[#allocation8 + $0x10] sm:$0xff]  ;;  %v285_v32 = vld [vmem:[#allocation8 + $0x18] sm:$0xff] }
  0xe3   :  { %v270_v59 = vadd.f32 %v262_v56, %v220_v54  ;;  %v271_v60 = vadd.f32 %v263_v57, %v221_v55 }
  0xe4   :  { %v230_v63 = vpop.permute.xlu0 %229 }
  0xe5   :  { %635 = vtanh.f32 %v270_v59  ;;  %v260_v0 = vmul.f32 %v253_v39, %v230_v63  ;;  %v261_v1 = vmul.f32 %v257_v40, %v230_v63  ;;  %v204_v2 = vpop.permute.xlu1 %203 }
  0xe6   :  { %637 = vtanh.f32 %v271_v60  ;;  %v218_v3 = vadd.f32 %v204_v2, %v186_v61  ;;  %v219_v4 = vadd.f32 %v204_v2, %v187_v62  ;;  %v420_v60 = vld [vmem:[#allocation11] sm:$0xff]  ;;  %v421_v62 = vld [vmem:[#allocation11 + $0x8] sm:$0xff] }
  0xe8   :  { %v268_v7 = vadd.f32 %v260_v0, %v218_v3  ;;  %v269_v8 = vadd.f32 %v261_v1, %v219_v4  ;;  %v226_v9 = vpop.permute.xlu0 %225 }
  0xe9   :  { %v258_v10 = vmul.f32 %v253_v39, %v226_v9  ;;  %v259_v11 = vmul.f32 %v257_v40, %v226_v9  ;;  %v199_v12 = vpop.permute.xlu1 %198 }
  0xea   :  { %v632_v13 = vpop.eup %631  ;;  %639 = vtanh.f32 %v268_v7  ;;  %v216_v14 = vadd.f32 %v199_v12, %v184_v5  ;;  %v217_v15 = vadd.f32 %v199_v12, %v185_v6 }
  0xeb   :  { %v634_v17 = vpop.eup %633  ;;  %641 = vtanh.f32 %v269_v8 }
  0xec   :  { %v266_v18 = vadd.f32 %v258_v10, %v216_v14  ;;  %v267_v19 = vadd.f32 %v259_v11, %v217_v15  ;;  %347 = vmatprep.subr.mxu0 %v634_v17 }
  0xed   :  { %348 = vmatpush1.msra.mxu0 %v632_v13  ;;  %v308_v36 = vpop.permute.xlu1 %307  ;;  %v303_v42 = vpop.permute.xlu0 %302 }
  0xee   :  { %643 = vtanh.f32 %v266_v18 }
  0xef   :  { %645 = vtanh.f32 %v267_v19 }
  0xf1   :  { %v298_v40 = vpop.permute.xlu1 %297  ;;  %v427_v63 = vpop.permute.xlu0 %426 }
  0xf2   :  { %v636_v20 = vpop.eup %635 }
  0xf3   :  { %v638_v21 = vpop.eup %637 }
  0xf4   :  { %349 = vmatprep.subr.mxu0 %v638_v21 }
  0xf5   :  { %350 = vmatpush1.msra.mxu0 %v636_v20  ;;  %v293_v49 = vpop.permute.xlu1 %292  ;;  %v526_v12 = vpop.permute.xlu0 %525 }
  0xf7   :  { %v640_v25 = vpop.eup %639 }
  0xf8   :  { %v642_v26 = vpop.eup %641 }
  0xf9   :  { %351 = vmatprep.subr.mxu0 %v642_v26  ;;  %v432_v4 = vpop.permute.xlu1 %431 }
  0xfa   :  { %352 = vmatpush1.msra.mxu0 %v640_v25 }
  0xfb   :  { %v644_v27 = vpop.eup %643 }
  0xfc   :  { %v646_v28 = vpop.eup %645 }
  0xfd   :  { %353 = vmatprep.subr.mxu0 %v646_v28  ;;  %v531_v11 = vpop.permute.xlu1 %530 }
  0xfe   :  { %354 = vmatpush1.msra.mxu0 %v644_v27 }
  0xff   :  { %605 = vmatmul.mubr.msk.f32.vlgmr.msra.gmra.mxu0 %vm310_vm0, %v282_v29 }
 0x100   :  { %393 = vmatprep.mubr.f32.mxu0 %v852_v16 }
 0x103   :  { %606 = vmatmul.mubr.msk.f32.gmra.mxu0 %vm310_vm0, %v283_v30 }
 0x104   :  { %399 = vmatprep.mubr.f32.mxu0 %v852_v16 }
 0x107   :  { %607 = vmatmul.mubr.msk.f32.gmra.mxu0 %vm310_vm0, %v284_v31  ;;  %v853_v31 = vmov 1966171168  }
 0x108   :  { %405 = vmatprep.mubr.f32.mxu0 %v852_v16 }
 0x10b   :  { %608 = vmatmul.mubr.msk.f32.gmra.mxu0 %vm310_vm0, %v285_v32  ;;  %v567_v32 = vunpack.c.l.s4 %v853_v31 }
 0x1bf   :  { %v389_v33 = vpop.f32.mrf.mxu0 }
 0x1c0   :  { %v390_v52 = vadd.f32 %v389_v33, %v293_v49 }
 0x1c1   :  { %v391_v34 = vpop.f32.mrf.mxu0 }
 0x1c2   :  { %v392_v51 = vadd.f32 %v391_v34, %v293_v49 }
 0x1c3   :  { %v395_v35 = vpop.f32.mrf.mxu0 }
 0x1c4   :  { %v396_v50 = vadd.f32 %v395_v35, %v298_v40  ;;  %v555_v35 = vpop.permute.xlu0 %554 }
 0x1c5   :  { %v397_v37 = vpop.f32.mrf.mxu0 }
 0x1c6   :  { %v398_v48 = vadd.f32 %v397_v37, %v298_v40 }
 0x1c7   :  { %v401_v38 = vpop.f32.mrf.mxu0 }
 0x1c8   :  { %v402_v47 = vadd.f32 %v401_v38, %v303_v42  ;;  %v568_v38 = vunpack.c.0.s8 %v567_v32 }
 0x1c9   :  { %v403_v39 = vpop.f32.mrf.mxu0 }
 0x1ca   :  { %v404_v45 = vadd.f32 %v403_v39, %v303_v42  ;;  %v560_v39 = vrot.slane %v555_v35, %v959_v24 }
 0x1cb   :  { %v407_v41 = vpop.f32.mrf.mxu0 }
 0x1cc   :  { %v408_v43 = vadd.f32 %v407_v41, %v308_v36 }
 0x1cd   :  { %v409_v44 = vpop.f32.mrf.mxu0 }
 0x1ce   :  { %v410_v46 = vadd.f32 %v409_v44, %v308_v36 }
 0x1d0   :  { %647 = vtanh.f32 %v410_v46 }
 0x1d1   :  { %649 = vtanh.f32 %v408_v43  ;;  %v571_v43 = vsub.s32 %v568_v38, %v956_v23 }
 0x1d2   :  { %651 = vtanh.f32 %v404_v45 }
 0x1d3   :  { %653 = vtanh.f32 %v402_v47 }
 0x1d4   :  { %655 = vtanh.f32 %v398_v48 }
 0x1d5   :  { %657 = vtanh.f32 %v396_v50 }
 0x1d6   :  { %659 = vtanh.f32 %v392_v51 }
 0x1d7   :  { %661 = vtanh.f32 %v390_v52 }
 0x1dd   :  { %v648_v53 = vpop.eup %647 }
 0x1de   :  { %v650_v54 = vpop.eup %649  ;;  %464 = vmatprep.subr.mxu1 %v648_v53 }
 0x1df   :  { %v652_v55 = vpop.eup %651  ;;  %465 = vmatpush1.msra.mxu1 %v650_v54 }
 0x1e0   :  { %v654_v56 = vpop.eup %653  ;;  %466 = vmatprep.subr.mxu1 %v652_v55 }
 0x1e1   :  { %v656_v57 = vpop.eup %655  ;;  %467 = vmatpush1.msra.mxu1 %v654_v56 }
 0x1e2   :  { %v658_v58 = vpop.eup %657  ;;  %468 = vmatprep.subr.mxu1 %v656_v57 }
 0x1e3   :  { %v660_v59 = vpop.eup %659  ;;  %469 = vmatpush1.msra.mxu1 %v658_v58 }
 0x1e4   :  { %v662_v61 = vpop.eup %661  ;;  %470 = vmatprep.subr.mxu1 %v660_v59 }
 0x1e5   :  { %471 = vmatpush1.msra.mxu1 %v662_v61 }
 0x1e6   :  { %609 = vmatmul.mubr.msk.f32.vlgmr.msra.gmra.mxu1 %vm310_vm0, %v420_v60 }
 0x1e7   :  { %510 = vmatprep.mubr.f32.mxu1 %v852_v16 }
 0x1ea   :  { %610 = vmatmul.mubr.msk.f32.gmra.mxu1 %vm310_vm0, %v421_v62 }
 0x2a6   :  { %v506_v0 = vpop.f32.mrf.mxu1 }
 0x2a7   :  { %v507_v1 = vadd.f32 %v506_v0, %v427_v63 }
 0x2a8   :  { %v508_v2 = vpop.f32.mrf.mxu1 }
 0x2a9   :  { %v509_v3 = vadd.f32 %v508_v2, %v427_v63  ;;  %663 = vtanh.f32 %v507_v1 }
 0x2aa   :  { %v512_v5 = vpop.f32.mrf.mxu1 }
 0x2ab   :  { %v513_v6 = vadd.f32 %v512_v5, %v432_v4  ;;  %665 = vtanh.f32 %v509_v3 }
 0x2ac   :  { %v514_v7 = vpop.f32.mrf.mxu1 }
 0x2ad   :  { %667 = vtanh.f32 %v513_v6  ;;  %v515_v8 = vadd.f32 %v514_v7, %v432_v4 }
 0x2af   :  { %669 = vtanh.f32 %v515_v8 }
 0x2b6   :  { %v664_v9 = vpop.eup %663 }
 0x2b7   :  { %v533_v13 = vmul.f32 %v664_v9, %v526_v12 }
 0x2b8   :  { %v666_v10 = vpop.eup %665 }
 0x2b9   :  { %v534_v17 = vmul.f32 %v666_v10, %v526_v12 }
 0x2ba   :  { %v668_v16 = vpop.eup %667 }
 0x2bb   :  { %v535_v14 = vmul.f32 %v668_v16, %v531_v11 }
 0x2bc   :  { %v670_v15 = vpop.eup %669 }
 0x2bd   :  { %v537_v18 = vadd.f32 %v535_v14, %v533_v13  ;;  %v536_v19 = vmul.f32 %v670_v15, %v531_v11 }
 0x2bf   :  { %v538_v20 = vrot.slane %v537_v18, 4  ;;  %v544_v21 = vadd.f32 %v536_v19, %v534_v17 }
 0x2c1   :  { %v545_v25 = vrot.slane %v544_v21, 4  ;;  %v539_v26 = vadd.f32 %v538_v20, %v537_v18 }
 0x2c3   :  { %v540_v27 = vrot.slane %v539_v26, 2  ;;  %v546_v28 = vadd.f32 %v545_v25, %v544_v21 }
 0x2c5   :  { %v541_v29 = vadd.f32 %v540_v27, %v539_v26  ;;  %v547_v30 = vrot.slane %v546_v28, 2 }
 0x2c7   :  { %v542_v33 = vrot.slane %v541_v29, 1  ;;  %v548_v34 = vadd.f32 %v547_v30, %v546_v28 }
 0x2c9   :  { %v543_v36 = vadd.f32 %v542_v33, %v541_v29  ;;  %v549_v37 = vrot.slane %v548_v34, 1 }
 0x2cb   :  { %v550_v40 = vadd.f32 %v549_v37, %v548_v34  ;;  %v561_v41 = vadd.f32 %v560_v39, %v543_v36 }
 0x2cd   :  { %v562_v42 = vadd.f32 %v560_v39, %v550_v40 }
 0x2cf   :  { %v565_v44 = vcombine.low %v561_v41, %v562_v42 }
 0x2d1   :  { %v572_v45 = vrot.slane %v565_v44, %v571_v43 }
 0x2d3   :  { %v579_v46 = vrot.slane %v572_v45, %v571_v43 }
 0x2d5   :  { %585 = vst.msk [vmem:[#allocation15] sm:$0x3] %vm583_vm1, %v579_v46 }
 0x2d6   :  { %822 = shalt.err (!%p819_p11)
}
 0x2d7   :  { %595 = dma.vmem_to_hbm [thread:$0]  %s593_s8, 32, %s992_s9, [#allocation5]  }
 0x2d8   :  { %839 = dma.done.wait [#allocation5], 32  }
 0x2d9   :  { %840 = vsyncadd [#allocation5], 4294967264 }
 0x2da   :  { %599 = vsyncpa [#allocation4], 1 }
 0x2db   :  { %600 = vsyncpa [#allocation7], 1 }
 0x2dc   :  { %601 = vsyncpa [#allocation10], 1 }
 0x2dd   :  { %602 = vsyncpa [#allocation13], 1 }
 0x2de   :  { %603 = vsyncpa [#allocation5], 1 }

</bundles_post_ra>
